<compile_context>
chip_gen: v6e
topology: v6e:2x2x1
jax: 0.10.0
libtpu: 0.0.40
codegen_flags: <defaults>
</compile_context>

<pallas_src>
import functools

import jax
import jax.numpy as jnp
from jax.experimental import pallas as pl
from jax.experimental.pallas import tpu as pltpu


_TARGET_BLOCK_BYTES = 4 * 1024 * 1024   # ~4 MiB per x block (16 MiB working set)
_MAX_LANE_TILE = 4096                   # full-N up to here; else 4096-wide tiles
_VMEM_LIMIT_BYTES = 32 * 1024 * 1024    # safe on v5e/v6e (128 MiB) and v7x (64 MiB)


def _layer_scale_kernel(gamma_ref, x_ref, o_ref, *, tc):
    # gamma_ref: (C_pad, 1) f32, resident for the whole call.
    # x_ref / o_ref: (tb, tc, tn) blocks.
    c = pl.program_id(1)
    start = pl.multiple_of(c * tc, tc)
    g = gamma_ref[pl.ds(start, tc), :]                    # (tc, 1) f32
    x = x_ref[...]
    o_ref[...] = (x.astype(jnp.float32) * g[None, :, :]).astype(o_ref.dtype)


def _choose_tiles(B, C, N, dtype_bytes):
    """Pick (tb, tc, tn) so one x block is ~_TARGET_BLOCK_BYTES, lane-dense."""
    # Lane tile: full N if reasonable (no ragged tail), else 4096 (multiple of 128).
    tn = N if N <= _MAX_LANE_TILE else _MAX_LANE_TILE

    # Sublane tile: full C if it fits the byte budget, else the largest multiple
    # of the dtype packing factor (8 f32 / 16 bf16 / 32 int8) that does.
    sub_mult = max(32 // dtype_bytes, 8)
    row_bytes = tn * dtype_bytes
    tc_cap = max(_TARGET_BLOCK_BYTES // max(row_bytes, 1), sub_mult)
    if C <= tc_cap:
        tc = C
    else:
        tc = max((tc_cap // sub_mult) * sub_mult, sub_mult)

    # Batch tile: only grows when C and N are untiled (small C*N case), to reach
    # the byte target; no alignment constraint on the leading dim.
    if tc == C and tn == N:
        blk_bytes = max(C * N * dtype_bytes, 1)
        tb = min(B, max(_TARGET_BLOCK_BYTES // blk_bytes, 1))
    else:
        tb = 1
    return tb, tc, tn


def layer_scale(x, gamma):
    """x: (B, C, N), gamma: (C,) -> (B, C, N) == x * gamma[None, :, None]."""
    B, C, N = x.shape
    dtype_bytes = jnp.dtype(x.dtype).itemsize
    tb, tc, tn = _choose_tiles(B, C, N, dtype_bytes)

    # Pad gamma rows up to a whole number of tc tiles so the in-kernel dynamic
    # slice never leaves the logical (resident) block.
    c_tiles = pl.cdiv(C, tc)
    C_pad = c_tiles * tc
    gamma2d = gamma.astype(jnp.float32).reshape(C, 1)
    if C_pad > C:
        gamma2d = jnp.pad(gamma2d, ((0, C_pad - C), (0, 0)))

    grid = (pl.cdiv(B, tb), c_tiles, pl.cdiv(N, tn))

    cost = pl.CostEstimate(
        flops=B * C * N,
        transcendentals=0,
        bytes_accessed=2 * B * C * N * dtype_bytes + C_pad * 4,
    )

    kernel = functools.partial(_layer_scale_kernel, tc=tc)

    return pl.pallas_call(
        kernel,
        out_shape=jax.ShapeDtypeStruct((B, C, N), x.dtype),
        grid=grid,
        in_specs=[
            # gamma: full padded block, constant index map -> resident, DMA'd once.
            pl.BlockSpec((C_pad, 1), lambda b, c, n: (0, 0)),
            # x: lane-dense ~4 MiB blocks.
            pl.BlockSpec((tb, tc, tn), lambda b, c, n: (b, c, n)),
        ],
        out_specs=pl.BlockSpec((tb, tc, tn), lambda b, c, n: (b, c, n)),
        cost_estimate=cost,
        compiler_params=pltpu.CompilerParams(
            dimension_semantics=("parallel", "parallel", "parallel"),
            vmem_limit_bytes=_VMEM_LIMIT_BYTES,
        ),
    )(gamma2d, x)


if __name__ == "__main__":
    layer_scale_init_value = 1e-6
    key = jax.random.PRNGKey(0)
    k0, k1 = jax.random.split(key)

    # --- Small-shape check (single full block, tb>1 path): B=2, C=4, N=8 ----
    B, C, N = 2, 4, 8
    x_small = jax.random.normal(k0, (B, C, N), dtype=jnp.float32)
    gamma_small = layer_scale_init_value * jnp.ones((C,), dtype=jnp.float32)

    ref_small = x_small * gamma_small[None, :, None]       # reference before call
    out_small = jax.block_until_ready(layer_scale(x_small, gamma_small))
    assert out_small.shape == x_small.shape
    assert out_small.dtype == x_small.dtype
    assert jnp.allclose(out_small, ref_small, atol=1e-7), "mismatch (small shape)"

    # --- Non-power-of-two / full-extent-N check: B=2, C=12, N=1300 ----------
    B2, C2, N2 = 2, 12, 1300
    x_big = jax.random.normal(k1, (B2, C2, N2), dtype=jnp.float32)
    gamma_big = layer_scale_init_value * jnp.arange(1, C2 + 1, dtype=jnp.float32)

    ref_big = x_big * gamma_big[None, :, None]
    out_big = jax.block_until_ready(layer_scale(x_big, gamma_big))
    assert out_big.shape == x_big.shape
    assert jnp.allclose(out_big, ref_big, atol=1e-7), "mismatch (ragged shape)"

    print("KERNEL_OK")
</pallas_src>

<mosaic_0001>
module attributes {stable_mosaic.version = 11 : i64} {
  func.func @_layer_scale_kernel(%arg0: i32, %arg1: i32, %arg2: i32, %arg3: memref<4x1xf32, #tpu.memory_space<vmem>>, %arg4: memref<2x4x8xf32, #tpu.memory_space<vmem>>, %arg5: memref<2x4x8xf32, #tpu.memory_space<vmem>>) attributes {dimension_semantics = [#tpu.dimension_semantics<parallel>, #tpu.dimension_semantics<parallel>, #tpu.dimension_semantics<parallel>], iteration_bounds = array<i64: 1, 1, 1>, scalar_prefetch = 0 : i64, scratch_operands = 0 : i64, tpu.core_type = #tpu.core_type<tc>, window_params = [{pipeline_mode = #tpu.pipeline_mode<synchronous>, transform_indices = @transform_0, window_bounds = array<i64: 4, 1>}, {transform_indices = @transform_1, window_bounds = array<i64: 2, 4, 8>}, {transform_indices = @transform_2, window_bounds = array<i64: 2, 4, 8>}]} {
    %c4_i32 = arith.constant 4 : i32
    %0 = arith.muli %arg1, %c4_i32 : i32
    %1 = tpu.assume_multiple %0, 4 : i32
    %2 = arith.index_cast %1 : i32 to index
    %c0 = arith.constant 0 : index
    %3 = vector.load %arg3[%2, %c0] : memref<4x1xf32, #tpu.memory_space<vmem>>, vector<4x1xf32>
    %c0_0 = arith.constant 0 : index
    %c0_1 = arith.constant 0 : index
    %c0_2 = arith.constant 0 : index
    %4 = vector.load %arg4[%c0_0, %c0_1, %c0_2] : memref<2x4x8xf32, #tpu.memory_space<vmem>>, vector<2x4x8xf32>
    %5 = vector.shape_cast %3 : vector<4x1xf32> to vector<1x4x1xf32>
    %6 = vector.broadcast %5 : vector<1x4x1xf32> to vector<2x4x8xf32>
    %7 = arith.mulf %4, %6 : vector<2x4x8xf32>
    %c0_3 = arith.constant 0 : index
    %c0_4 = arith.constant 0 : index
    %c0_5 = arith.constant 0 : index
    %8 = vector.load %arg5[%c0_3, %c0_4, %c0_5] : memref<2x4x8xf32, #tpu.memory_space<vmem>>, vector<2x4x8xf32>
    tpu.vector_store %arg5[%c0_3, %c0_4, %c0_5], %7 {strides = array<i32>} : memref<2x4x8xf32, #tpu.memory_space<vmem>>, vector<2x4x8xf32>,
    return
  }
  func.func @transform_0(%arg0: i32, %arg1: i32, %arg2: i32) -> (i32, i32) {
    %c0_i32 = arith.constant 0 : i32
    %c0_i32_0 = arith.constant 0 : i32
    %c0_i32_1 = arith.constant 0 : i32
    return %c0_i32, %c0_i32_0 : i32, i32
  }
  func.func @transform_1(%arg0: i32, %arg1: i32, %arg2: i32) -> (i32, i32, i32) {
    %c0_i32 = arith.constant 0 : i32
    return %arg0, %arg1, %arg2 : i32, i32, i32
  }
  func.func @transform_2(%arg0: i32, %arg1: i32, %arg2: i32) -> (i32, i32, i32) {
    %c0_i32 = arith.constant 0 : i32
    return %arg0, %arg1, %arg2 : i32, i32, i32
  }
}

</mosaic_0001>

<bundles_post_ra>
// kernel: tpu_custom_call.1
= control target key start
LH: loop header
LB: loop body
LE: loop exit
PB: predicated region body
PF: predicated region fallthrough
CT: control target
= control target key end

     0   :  { %7 = vsyncpa [#allocation3], 0  ;;  %s143_s0 = inlined_call_operand.vmem [shape: f32[4,1], index: 0, kind: input, shape index: {}]   ;;  %s144_s1 = inlined_call_operand.hbm [shape: f32[2,4,8], index: 1, kind: input, shape index: {}]   ;;  %s145_s2 = inlined_call_operand.hbm [shape: f32[2,4,8], index: 2, kind: output, shape index: {}]  }
   0x1   :  { %8 = vsyncpa [#allocation4], 0  ;;  %s108_s9 = smov [#allocation2]  }
   0x2   :  { %s16_s10 = sshll.u32 %s108_s9, 4  ;;  %s17_s10 = int_to_ptr.vmem [resolvable:$true] %s16_s10 }
   0x3   :  { %s72_s11 = scalar_lea.vmem %s17_s10, 128  ;;  %p77_p1 = scmp.lt.s32.totalorder %s17_s10, %s17_s10 }
   0x4   :  { %p73_p0 = scmp.ne.s32.totalorder %s17_s10, %s72_s11  ;;  %p78_p2 = scmp.lt.s32.totalorder %s72_s11, %s72_s11 }
   0x6   :  { %p79_p3 = por %p78_p2, %p77_p1 }
   0x8   :  { %p80_p4 = pnand %p79_p3, %p73_p0 }
   0xa   :  { %83 = shalt.err (!%p80_p4)
}
   0xb   :  { %s109_s12 = smov 64   ;;  %s110_s13 = smov 4  }
   0xc   :  { %22 = dma.hbm_to_vmem [thread:$0]  %s144_s1, 128, %s17_s10, [#allocation3], %s109_s12, %s109_s12, %s110_s13  }
   0xd   :  { %104 = dma.done.wait [#allocation3], 128  }
   0xe   :  { %105 = vsyncadd [#allocation3], 4294967168  ;;  %v111_v0 = vmov 0   ;;  %v28_v1 = vld [vmem:[%s143_s0] sm:$0xf]  ;;  %s112_s18 = smov [#allocation5]  }
   0xf   :  { %63 = vset.pattern.permute.xlu0 %v111_v0  ;;  %v29_v2 = vld [vmem:[#allocation2] sm:$0xf]  ;;  %v30_v3 = vld [vmem:[#allocation2 + $0x4] sm:$0xf]  ;;  %s46_s19 = sshll.u32 %s112_s18, 4  ;;  %vm38_vm0 = vcmask 60416   ;;  %s47_s19 = int_to_ptr.vmem [resolvable:$true] %s46_s19 }
  0x10   :  { %33 = vperm.xlu0 %63, %v28_v1   ;;  %s84_s1 = scalar_lea.vmem %s47_s19, 128  ;;  %p89_p6 = scmp.lt.s32.totalorder %s47_s19, %s47_s19 }
  0x11   :  { %p85_p5 = scmp.ne.s32.totalorder %s47_s19, %s84_s1  ;;  %p90_p7 = scmp.lt.s32.totalorder %s84_s1, %s84_s1 }
  0x13   :  { %p91_p8 = por %p90_p7, %p89_p6 }
  0x15   :  { %p92_p9 = pnand %p91_p8, %p85_p5 }
  0x8b   :  { %v34_v4 = vpop.permute.xlu0 %33 }
  0x8c   :  { %v36_v5 = vmul.f32 %v34_v4, %v29_v2  ;;  %v37_v6 = vmul.f32 %v34_v4, %v30_v3 }
  0x8e   :  { %39 = vst.msk [vmem:[#allocation5] sm:$0xf] %vm38_vm0, %v36_v5  ;;  %40 = vst.msk [vmem:[#allocation5 + $0x4] sm:$0xf] %vm38_vm0, %v37_v6 }
  0x8f   :  { %95 = shalt.err (!%p92_p9)
}
  0x90   :  { %52 = dma.vmem_to_hbm [thread:$0]  %s47_s19, 128, %s145_s2, [#allocation4], %s109_s12, %s109_s12, %s110_s13  }
  0x91   :  { %106 = dma.done.wait [#allocation4], 128  }
  0x92   :  { %107 = vsyncadd [#allocation4], 4294967168 }
  0x93   :  { %56 = vsyncpa [#allocation3], 1 }
  0x94   :  { %57 = vsyncpa [#allocation4], 1 }

</bundles_post_ra>
